<compile_context>
chip_gen: v7x
topology: tpu7x:2x2x1
jax: 0.10.0
libtpu: 0.0.40
codegen_flags: <defaults>
</compile_context>

<pallas_src>
import functools

import numpy as np
import jax
import jax.numpy as jnp
from jax.experimental import pallas as pl
from jax.experimental.pallas import tpu as pltpu


# ---------------------------------------------------------------------------
# Host-side helpers (static shapes).
# ---------------------------------------------------------------------------
def _round_up(a: int, m: int) -> int:
    return ((a + m - 1) // m) * m


def _nearest_src_indices(out_size: int, in_size: int) -> np.ndarray:
    """Source index per output index for mode='nearest' (clamped floor)."""
    dst = np.arange(out_size, dtype=np.int64)
    src = np.minimum((dst * in_size) // out_size, in_size - 1)
    return src.astype(np.int32)


# ---------------------------------------------------------------------------
# Kernels: one gathered source row per grid step, column selection on the MXU.
# ---------------------------------------------------------------------------
def _rows_kernel_std(hi_ref, x_ref, ct_ref, o_ref, *, compute_dtype):
    # x_ref : (TB, 1, 1, W)   gathered source row for TB slices
    # ct_ref: (W, OW)         one-hot column selection (VMEM resident)
    # o_ref : (TB, 1, 1, OW)  output row (lane-dense when OW >= 128)
    del hi_ref  # only used by the index_maps
    xw = x_ref[:, 0, 0, :].astype(compute_dtype)                    # (TB, W)
    r = jnp.dot(xw, ct_ref[...], preferred_element_type=jnp.float32)  # (TB, OW)
    o_ref[:, 0, 0, :] = r.astype(o_ref.dtype)


def _rows_kernel_lanes(hi_ref, x_ref, ct_ref, o_ref, *, compute_dtype):
    # x_ref : (TB, 1, 1, W)
    # ct_ref: (OW, W)         one-hot rows
    # o_ref : (1, OW, TB)     batch tile on lanes -> lane-dense for small OW
    del hi_ref
    xw = x_ref[:, 0, 0, :].astype(compute_dtype)                    # (TB, W)
    r = jax.lax.dot_general(                                        # (OW, TB)
        ct_ref[...], xw,
        dimension_numbers=(((1,), (1,)), ((), ())),
        preferred_element_type=jnp.float32)
    o_ref[0, :, :] = r.astype(o_ref.dtype)


# ---------------------------------------------------------------------------
# Wrapper.
# ---------------------------------------------------------------------------
def interpolate_nearest(x: jax.Array, size=(1, 1)) -> jax.Array:
    """Pallas equivalent of F.interpolate(x, size=size) (mode='nearest'), NCHW."""
    N, C, H, W = x.shape
    OH, OW = int(size[0]), int(size[1])
    B = N * C

    out_dtype = x.dtype
    if jnp.issubdtype(x.dtype, jnp.floating):
        compute_dtype = x.dtype            # bf16 stays bf16 (one-hot picks are exact)
    else:
        compute_dtype = jnp.float32        # exact for |x| < 2**24

    hi = jnp.asarray(_nearest_src_indices(OH, H))                    # (OH,) int32, prefetched
    wi = _nearest_src_indices(OW, W)                                 # folded into C^T host-side

    # Lane-dense orientation: batch tile on the output lane axis when OW is
    # narrow; for wide OW the plain (TB, OW) orientation is already lane-dense
    # and avoids an extra pass over a large output.
    use_lanes = (OW < 128) and (OW <= W or OH * OW <= 256)

    if use_lanes:
        ct_np = (np.arange(W)[None, :] == wi[:, None]).astype(np.float32)   # (OW, W)
    else:
        ct_np = (np.arange(W)[:, None] == wi[None, :]).astype(np.float32)   # (W, OW)
    ct = jnp.asarray(ct_np, dtype=compute_dtype)

    x4 = x.reshape(B, H, 1, W)             # metadata-only reshape, no HBM copy

    # ---- batch-tile sizing with complete VMEM accounting --------------------
    x_isz = jnp.dtype(x.dtype).itemsize
    c_isz = jnp.dtype(compute_dtype).itemsize
    o_isz = jnp.dtype(out_dtype).itemsize
    try:
        vmem_cap = int(pltpu.get_tpu_info().vmem_capacity_bytes)
    except Exception:
        vmem_cap = 64 * 1024 * 1024        # assume the smallest (v7x, per TensorCore)
    budget = min(16 * 1024 * 1024, vmem_cap // 5)
    ct_bytes = 2 * W * OW * c_isz          # count 2 buffers even though it stays resident
    # per batch-slice: x block (x2 buffers) + out block (x2) + in-kernel temps
    per_slice = 2 * W * x_isz + 2 * OW * o_isz + W * c_isz + 4 * OW
    tb_cap = min(2048, max(8, (budget - ct_bytes) // per_slice))

    if B <= tb_cap:
        TB = B                             # single full-extent batch block (always legal)
    elif use_lanes:
        # output lane dim: must be a multiple of 128; prefer 256 for v6e/v7x MXUs
        TB = (tb_cap // 256) * 256 if tb_cap >= 256 else 128
    else:
        TB = (tb_cap // 256) * 256 if tb_cap >= 256 else max(8, (tb_cap // 8) * 8)

    num_b = -(-B // TB)
    # Keep >= 2 grid blocks when feasible so both v7x TensorCores get work.
    if num_b * OH == 1 and B >= 16:
        if not use_lanes:
            TB = _round_up(-(-B // 2), 8)
            num_b = -(-B // TB)
        elif B >= 256:                     # lane alignment forbids splitting smaller B
            TB = _round_up(-(-B // 2), 128)
            num_b = -(-B // TB)

    total_vmem = (2 * TB * W * x_isz + 2 * TB * OW * o_isz + ct_bytes
                  + TB * (W * c_isz + 4 * OW) + (2 << 20))
    vmem_limit = int(min(int(0.625 * vmem_cap), max(24 << 20, 2 * total_vmem)))
    vmem_limit = int(max(vmem_limit, total_vmem + (2 << 20)))

    grid = (num_b, OH)
    # Row gather: block index along H comes straight from the prefetched hi table.
    x_spec = pl.BlockSpec((TB, 1, 1, W), lambda b, i, hi_r: (b, hi_r[i], 0, 0))

    if use_lanes:
        kernel = functools.partial(_rows_kernel_lanes, compute_dtype=compute_dtype)
        ct_spec = pl.BlockSpec((OW, W), lambda b, i, hi_r: (0, 0))      # VMEM resident
        out_shape = jax.ShapeDtypeStruct((OH, OW, B), out_dtype)
        out_spec = pl.BlockSpec((1, OW, TB), lambda b, i, hi_r: (i, 0, b))
    else:
        kernel = functools.partial(_rows_kernel_std, compute_dtype=compute_dtype)
        ct_spec = pl.BlockSpec((W, OW), lambda b, i, hi_r: (0, 0))      # VMEM resident
        out_shape = jax.ShapeDtypeStruct((B, OH, 1, OW), out_dtype)
        out_spec = pl.BlockSpec((TB, 1, 1, OW), lambda b, i, hi_r: (b, i, 0, 0))

    y = pl.pallas_call(
        kernel,
        out_shape=out_shape,
        grid_spec=pltpu.PrefetchScalarGridSpec(
            num_scalar_prefetch=1,
            grid=grid,
            in_specs=[x_spec, ct_spec],
            out_specs=out_spec,
        ),
        compiler_params=pltpu.CompilerParams(
            dimension_semantics=("parallel", "parallel"),
            vmem_limit_bytes=vmem_limit,
        ),
    )(hi, x4, ct)

    if use_lanes:
        # (OH, OW, B) -> (N, C, OH, OW); metadata-only when OH = OW = 1.
        out = jnp.moveaxis(y, -1, 0).reshape(N, C, OH, OW)
    else:
        out = y.reshape(N, C, OH, OW)
    return out


# ---------------------------------------------------------------------------
# Pure-JAX reference (same clamped-floor index rule).
# ---------------------------------------------------------------------------
def _reference_nearest(x, size):
    H, W = x.shape[-2:]
    OH, OW = size
    hi = jnp.minimum((jnp.arange(OH) * H) // OH, H - 1)
    wi = jnp.minimum((jnp.arange(OW) * W) // OW, W - 1)
    return x[:, :, hi, :][:, :, :, wi]


if __name__ == "__main__":
    key = jax.random.PRNGKey(0)
    x = jax.random.normal(key, (2, 4, 16, 16), dtype=jnp.float32)

    # Module default: size=(1, 1)  (lane-dense transposed path, trivial re-layout).
    out = jax.block_until_ready(interpolate_nearest(x, size=(1, 1)))
    ref = _reference_nearest(x, (1, 1))
    assert out.shape == (2, 4, 1, 1), out.shape
    assert out.dtype == x.dtype
    assert jnp.allclose(out, ref, atol=1e-6), "mismatch vs reference at (1,1)"

    # Non-divisible downsample (lane-dense path) and an upsample wide enough to
    # take the standard orientation.
    for size in [(7, 5), (20, 24)]:
        o = jax.block_until_ready(interpolate_nearest(x, size=size))
        r = _reference_nearest(x, size)
        assert o.shape == (2, 4) + size, o.shape
        assert jnp.allclose(o, r, atol=1e-6), f"mismatch vs reference at {size}"

    # bf16 input stays bf16 end to end; one-hot picks are exact.
    xb = x.astype(jnp.bfloat16)
    ob = jax.block_until_ready(interpolate_nearest(xb, size=(1, 1)))
    rb = _reference_nearest(xb, (1, 1))
    assert ob.dtype == jnp.bfloat16
    assert jnp.array_equal(ob, rb)

    print("KERNEL_OK")
</pallas_src>

<mosaic_0001>
module attributes {stable_mosaic.version = 11 : i64} {
  func.func @_rows_kernel_lanes(%arg0: i32, %arg1: i32, %arg2: memref<1xi32, #tpu.memory_space<smem>>, %arg3: memref<8x1x1x16xf32, #tpu.memory_space<vmem>>, %arg4: memref<1x16xf32, #tpu.memory_space<vmem>>, %arg5: memref<1x1x8xf32, #tpu.memory_space<vmem>>) attributes {dimension_semantics = [#tpu.dimension_semantics<parallel>, #tpu.dimension_semantics<parallel>], iteration_bounds = array<i64: 1, 1>, scalar_prefetch = 1 : i64, scratch_operands = 0 : i64, tpu.core_type = #tpu.core_type<tc>, window_params = [{transform_indices = @transform_0, window_bounds = array<i64: 8, 1, 1, 16>}, {pipeline_mode = #tpu.pipeline_mode<synchronous>, transform_indices = @transform_1, window_bounds = array<i64: 1, 16>}, {transform_indices = @transform_2, window_bounds = array<i64: 1, 1, 8>}]} {
    %c0 = arith.constant 0 : index
    %c0_0 = arith.constant 0 : index
    %c0_1 = arith.constant 0 : index
    %c0_2 = arith.constant 0 : index
    %0 = vector.load %arg3[%c0, %c0_0, %c0_1, %c0_2] : memref<8x1x1x16xf32, #tpu.memory_space<vmem>>, vector<8x1x1x16xf32>
    %1 = vector.shape_cast %0 : vector<8x1x1x16xf32> to vector<8x16xf32>
    %c0_3 = arith.constant 0 : index
    %c0_4 = arith.constant 0 : index
    %2 = vector.load %arg4[%c0_3, %c0_4] : memref<1x16xf32, #tpu.memory_space<vmem>>, vector<1x16xf32>
    %cst = arith.constant dense<0.000000e+00> : vector<1x8xf32>
    %3 = tpu.matmul %2, %1, %cst {dimension_numbers = #tpu.dot_dimension_numbers<[1], [1], [0], [0], [0, 0, 1, 0], [], []>} : vector<1x16xf32>, vector<8x16xf32>, vector<1x8xf32> -> vector<1x8xf32>
    %c0_5 = arith.constant 0 : index
    %c0_6 = arith.constant 0 : index
    %c0_7 = arith.constant 0 : index
    %4 = vector.load %arg5[%c0_5, %c0_6, %c0_7] : memref<1x1x8xf32, #tpu.memory_space<vmem>>, vector<1x1x8xf32>
    %5 = vector.shape_cast %4 : vector<1x1x8xf32> to vector<1x8xf32>
    %6 = vector.shape_cast %3 : vector<1x8xf32> to vector<1x1x8xf32>
    tpu.vector_store %arg5[%c0_5, %c0_6, %c0_7], %6 {strides = array<i32>} : memref<1x1x8xf32, #tpu.memory_space<vmem>>, vector<1x1x8xf32>,
    return
  }
  func.func @transform_0(%arg0: i32, %arg1: i32, %arg2: memref<1xi32, #tpu.memory_space<smem>>) -> (i32, i32, i32, i32) {
    %0 = arith.index_cast %arg1 : i32 to index
    %1 = memref.load %arg2[%0] : memref<1xi32, #tpu.memory_space<smem>>
    %c0_i32 = arith.constant 0 : i32
    %c0_i32_0 = arith.constant 0 : i32
    %c0_i32_1 = arith.constant 0 : i32
    return %arg0, %1, %c0_i32, %c0_i32_0 : i32, i32, i32, i32
  }
  func.func @transform_1(%arg0: i32, %arg1: i32, %arg2: memref<1xi32, #tpu.memory_space<smem>>) -> (i32, i32) {
    %c0_i32 = arith.constant 0 : i32
    %c0_i32_0 = arith.constant 0 : i32
    %c0_i32_1 = arith.constant 0 : i32
    return %c0_i32, %c0_i32_0 : i32, i32
  }
  func.func @transform_2(%arg0: i32, %arg1: i32, %arg2: memref<1xi32, #tpu.memory_space<smem>>) -> (i32, i32, i32) {
    %c0_i32 = arith.constant 0 : i32
    %c0_i32_0 = arith.constant 0 : i32
    return %arg1, %c0_i32, %arg0 : i32, i32, i32
  }
}

</mosaic_0001>

<bundles_post_ra>
// kernel: tpu_custom_call.1
= control target key start
LH: loop header
LB: loop body
LE: loop exit
PB: predicated region body
PF: predicated region fallthrough
CT: control target
= control target key end

     0   :  { %9 = vsyncpa [#allocation5], 0  ;;  %s316_s0 = inlined_call_operand.<no memory space> [shape: s32[1], index: 0, kind: input, shape index: {}]   ;;  %s317_s1 = inlined_call_operand.hbm [shape: f32[8,16,1,16], index: 1, kind: input, shape index: {}]   ;;  %s318_s2 = inlined_call_operand.vmem [shape: f32[1,16], index: 2, kind: input, shape index: {}]   ;;  %s319_s3 = inlined_call_operand.hbm [shape: f32[1,1,8], index: 3, kind: output, shape index: {}]  }
   0x1   :  { %10 = vsyncpa [#allocation6], 0  ;;  %s193_s14 = sshll.u32 %s316_s0, 4  ;;  %s261_s18 = smov [#allocation4]  }
   0x2   :  { %s18_s17 = scalar_lea.hbm %s317_s1, %s193_s14  ;;  %s19_s19 = sshll.u32 %s261_s18, 4  ;;  %s20_s19 = int_to_ptr.vmem [resolvable:$true] %s19_s19 }
   0x3   :  { %s211_s20 = scalar_lea.hbm %s18_s17, 128  ;;  %s213_s23 = scalar_lea.hbm %s317_s1, 2048 }
   0x4   :  { %p212_p0 = scmp.ne.s32.totalorder %s18_s17, %s211_s20  ;;  %p214_p1 = scmp.lt.u32.totalorder %s18_s17, %s317_s1 }
   0x5   :  { %p215_p2 = scmp.lt.u32.totalorder %s213_s23, %s211_s20  ;;  %p217_p4 = scmp.lt.u32.totalorder %s211_s20, %s18_s17 }
   0x7   :  { %p216_p3 = por %p215_p2, %p214_p1 }
   0x9   :  { %p218_p5 = por %p217_p4, %p216_p3 }
   0xb   :  { %p219_p6 = pnand %p218_p5, %p212_p0 }
   0xd   :  { %222 = shalt.err (!%p219_p6)
}
   0xe   :  { %s223_s0 = scalar_lea.vmem %s20_s19, 128  ;;  %p228_p8 = scmp.lt.s32.totalorder %s20_s19, %s20_s19 }
   0xf   :  { %p224_p7 = scmp.ne.s32.totalorder %s20_s19, %s223_s0  ;;  %p229_p9 = scmp.lt.s32.totalorder %s223_s0, %s223_s0 }
  0x11   :  { %p230_p10 = por %p229_p9, %p228_p8 }
  0x13   :  { %p231_p11 = pnand %p230_p10, %p224_p7 }
  0x15   :  { %234 = shalt.err (!%p231_p11)
}
  0x16   :  { %s262_s26 = smov 256   ;;  %s263_s27 = smov 16  }
  0x17   :  { %s264_s28 = smov 1  }
  0x18   :  { %25 = dma.hbm_to_vmem [thread:$0]  %s18_s17, 128, %s20_s19, [#allocation5], %s262_s26, %s263_s27, %s264_s28  }
  0x19   :  { %257 = dma.done.wait [#allocation5], 128  }
  0x1a   :  { %258 = vsyncadd [#allocation5], 4294967168  ;;  %v56_v0 = vlaneseq  ;;  %v265_v1 = vmov 0.0   ;;  %v266_v2 = vmov 1966171168   ;;  %vm267_vm0 = vmmov 0  }
  0x1b   :  { %198 = vmatprep.subr.mxu0 %v265_v1  ;;  %v54_v3 = vunpack.c.l.s4 %v266_v2  ;;  %200 = vmatprep.mubr.msk.f32.mxu0 %vm267_vm0, %v265_v1  ;;  %v32_v7 = vld [vmem:[#allocation4] sm:$0x1]  ;;  %v33_v8 = vld [vmem:[#allocation4 + $0x1] sm:$0x1]  ;;  %v34_v9 = vld [vmem:[#allocation4 + $0x2] sm:$0x1] }
  0x1c   :  { %v57_v4 = vshrl.u32 %v56_v0, 7  ;;  %v35_v10 = vld [vmem:[#allocation4 + $0x3] sm:$0x1]  ;;  %v36_v11 = vld [vmem:[#allocation4 + $0x4] sm:$0x1]  ;;  %v49_v13 = vcombine.low %v32_v7, %v33_v8  ;;  %vm98_vm1 = vcmask 130048  }
  0x1d   :  { %v55_v5 = vunpack.c.0.s8 %v54_v3  ;;  %v37_v12 = vld [vmem:[#allocation4 + $0x5] sm:$0x1]  ;;  %v38_v14 = vld [vmem:[#allocation4 + $0x6] sm:$0x1]  ;;  %v39_v15 = vld [vmem:[#allocation4 + $0x7] sm:$0x1]  ;;  %v50_v16 = vcombine.low %v34_v9, %v35_v10 }
  0x1e   :  { %v51_v17 = vcombine.low %v36_v11, %v37_v12  ;;  %v52_v18 = vcombine.low %v38_v14, %v39_v15  ;;  %v40_v28 = vld [vmem:[%s318_s2] sm:$0x1]  ;;  %s268_s30 = smov [#allocation7]   ;;  %vm174_vm2 = vcmask 57344  }
  0x1f   :  { %v58_v6 = vsub.s32 %v55_v5, %v57_v4  ;;  %s182_s4 = sshll.u32 %s268_s30, 4  ;;  %s183_s4 = int_to_ptr.vmem [resolvable:$true] %s182_s4 }
  0x20   :  { %s235_s5 = scalar_lea.vmem %s183_s4, 16  ;;  %s239_s6 = scalar_lea.vmem %s183_s4, 32 }
  0x21   :  { %v59_v19 = vrot.slane %v49_v13, %v58_v6  ;;  %v66_v20 = vrot.slane %v50_v16, %v58_v6  ;;  %v73_v21 = vrot.slane %v51_v17, %v58_v6  ;;  %v80_v22 = vrot.slane %v52_v18, %v58_v6  ;;  %p236_p12 = scmp.ne.s32.totalorder %s183_s4, %s235_s5  ;;  %p240_p13 = scmp.lt.s32.totalorder %s183_s4, %s183_s4 }
  0x22   :  { %p241_p0 = scmp.lt.s32.totalorder %s239_s6, %s235_s5 }
  0x23   :  { %v81_v23 = vcombine.low %v59_v19, %v66_v20  ;;  %v82_v24 = vcombine.low %v73_v21, %v80_v22 }
  0x24   :  { %p242_p1 = por %p241_p0, %p240_p13 }
  0x25   :  { %v89_v25 = vrot.slane %v81_v23, %v58_v6  ;;  %v96_v26 = vrot.slane %v82_v24, %v58_v6 }
  0x26   :  { %p243_p2 = pnand %p242_p1, %p236_p12 }
  0x27   :  { %v97_v27 = vcombine.low %v89_v25, %v96_v26 }
  0x29   :  { %199 = vmatpush3.xpose.msk.msra.mxu0 %vm98_vm1, %v97_v27 }
  0x2c   :  { %201 = vmatmul.mubr.msk.f32.vlgmr.msra.gmra.mrb[0].mxu0 %vm98_vm1, %v40_v28 }
  0xff   :  { %v170_v29 = vpop.f32.mrb[0].mxu0 }
 0x100   :  { %v202_v30 = vpop.f32.mrb[1].mxu0  ;;  %175 = vst.msk [vmem:[#allocation7] sm:$0x1] %vm174_vm2, %v170_v29 }
 0x101   :  { %246 = shalt.err (!%p243_p2)
}
 0x102   :  { %s247_s2 = scalar_lea.hbm %s319_s3, 16 }
 0x103   :  { %p248_p3 = scmp.ne.s32.totalorder %s319_s3, %s247_s2  ;;  %p251_p4 = scmp.lt.u32.totalorder %s247_s2, %s319_s3 }
 0x105   :  { %p253_p5 = pnand %p251_p4, %p248_p3 }
 0x107   :  { %256 = shalt.err (!%p253_p5)
}
 0x108   :  { %185 = dma.vmem_to_hbm [thread:$0]  %s183_s4, 16, %s319_s3, [#allocation6]  }
 0x109   :  { %259 = dma.done.wait [#allocation6], 16  }
 0x10a   :  { %260 = vsyncadd [#allocation6], 4294967280 }
 0x10b   :  { %189 = vsyncpa [#allocation5], 1 }
 0x10c   :  { %190 = vsyncpa [#allocation6], 1 }

</bundles_post_ra>
